<compile_context>
chip_gen: v7x
topology: tpu7x:2x2x1
jax: 0.10.0
libtpu: 0.0.40
codegen_flags: <defaults>
</compile_context>

<pallas_src>
import functools
import math

import jax
import jax.numpy as jnp
from jax.experimental import pallas as pl
from jax.experimental.pallas import tpu as pltpu


def _icnn_kernel(num_hidden, *refs):
    """Fused ICNN forward for one batch tile, batch-in-lanes layout.

    refs = (xT_ref,
            wx_w[0], wx_b[0], ..., wx_w[nh], wx_b[nh],      # nh+1 plain Linear layers
            wz_w[0], wz_b[0], ..., wz_w[nh-1], wz_b[nh-1],  # nh pre-transformed NN-Linear layers
            out_ref)

    xT_ref is (F, tile_b); every intermediate is (hidden_i, tile_b); the output
    block is (1, tile_b) — all lane-dense.  Weights are [out, in] (PyTorch
    orientation); NonNegativeLinear weights/biases arrive already as
    gain*softplus(W) / gain*b, so only plain matmul + bias-add remains.
    """
    x_ref = refs[0]
    out_ref = refs[-1]
    prefs = refs[1:-1]

    n_wx = num_hidden + 1
    wx = [(prefs[2 * i], prefs[2 * i + 1]) for i in range(n_wx)]
    off = 2 * n_wx
    wz = [(prefs[off + 2 * i], prefs[off + 2 * i + 1]) for i in range(num_hidden)]

    x = x_ref[...].astype(jnp.float32)                     # (F, tile_b)

    def linear(w_ref, b_ref, inp):
        # (out, in) @ (in, tile_b) + (out, 1) -> (out, tile_b), lane-dense
        return (jnp.dot(w_ref[...].astype(jnp.float32), inp,
                        preferred_element_type=jnp.float32)
                + b_ref[...].astype(jnp.float32))

    # z = relu(w_xs[0](x))
    z = jax.nn.relu(linear(*wx[0], x))

    # hidden ICNN layers: z = relu(Wz(z) + Wx(x))
    for i in range(num_hidden - 1):
        z = jax.nn.relu(linear(*wz[i], z) + linear(*wx[i + 1], x))

    # final: y = relu(w_zs[-1](z) + w_xs[-1](x))  -> (1, tile_b)
    y = jax.nn.relu(linear(*wz[-1], z) + linear(*wx[-1], x))

    out_ref[...] = y.astype(out_ref.dtype)


def icnn_forward(x, params, input_size, hs, *, tile_b=256):
    """params = {'wx': [(W[out,in], b[out]), ...], 'wz': [(W[out,in], b[out]), ...]} (raw weights)."""
    single = x.ndim == 1
    if single:
        x = x[None, :]
    B, F = x.shape
    assert F == input_size
    num_hidden = len(hs)

    # Pad the batch up to a multiple of tile_b (no divisibility requirement on B).
    n_tiles = pl.cdiv(B, tile_b)
    B_pad = n_tiles * tile_b

    # Batch-in-lanes layout: (F, B_pad), zero-padded tail rows of the batch.
    xT = jnp.pad(x.T.astype(jnp.float32), ((0, 0), (0, B_pad - B)))

    # Flatten params; hoist the grid-invariant softplus + 1/in_features gain out
    # of the kernel (numerically identical to NonNegativeLinear).
    # TODO(synk): optionally cast x / weights to bf16 (f32 accumulation) on v6e/v7x
    # once a looser tolerance vs. the f32 reference is acceptable.
    flat_params = []
    for (w, b) in params["wx"]:
        flat_params += [w.astype(jnp.float32),
                        b.reshape(-1, 1).astype(jnp.float32)]
    for i, (w, b) in enumerate(params["wz"]):
        gain = 1.0 / float(hs[i])                  # w_zs[i].in_features == hs[i]
        flat_params += [gain * jax.nn.softplus(w.astype(jnp.float32)),
                        gain * b.reshape(-1, 1).astype(jnp.float32)]

    # BlockSpecs: tile x / out over the batch (lane) axis; parameters are tiny,
    # grid-invariant full blocks (constant index_map -> no re-DMA across steps).
    x_spec = pl.BlockSpec((input_size, tile_b), lambda i: (0, i))
    param_specs = [pl.BlockSpec(p.shape, lambda i: (0, 0)) for p in flat_params]
    out_spec = pl.BlockSpec((1, tile_b), lambda i: (0, i))

    kernel = functools.partial(_icnn_kernel, num_hidden)

    y = pl.pallas_call(
        kernel,
        out_shape=jax.ShapeDtypeStruct((1, B_pad), jnp.float32),
        grid_spec=pltpu.PrefetchScalarGridSpec(
            num_scalar_prefetch=0,
            grid=(n_tiles,),
            in_specs=[x_spec] + param_specs,
            out_specs=out_spec,
        ),
        compiler_params=pltpu.CompilerParams(
            dimension_semantics=("parallel",)),   # shards batch tiles across v7x's 2 TCs
    )(xT, *flat_params)

    y = y[0, :B]                     # (B,)  — drop batch padding
    if single:
        y = jnp.squeeze(y, axis=0)
    return y


def init_params(key, input_size, hs):
    """Deterministic synthetic init (kaiming-uniform-like bounds). W stored [out, in] (PyTorch)."""
    num_hidden = len(hs)
    params = {"wx": [], "wz": []}

    def make_linear(k, fan_in, fan_out):
        kw, kb = jax.random.split(k)
        bound_w = math.sqrt(6.0 / fan_in) / math.sqrt(1.0 + 5.0)  # kaiming_uniform(a=sqrt(5))
        bound_b = 1.0 / math.sqrt(fan_in)
        w = jax.random.uniform(kw, (fan_out, fan_in), jnp.float32, -bound_w, bound_w)
        b = jax.random.uniform(kb, (fan_out,), jnp.float32, -bound_b, bound_b)
        return (w, b)

    keys = jax.random.split(key, 2 * (num_hidden + 1))
    ki = 0
    # w_xs: input_size -> hs[0], ..., hs[-1], then input_size -> 1
    wx_outs = list(hs) + [1]
    for out_f in wx_outs:
        params["wx"].append(make_linear(keys[ki], input_size, out_f)); ki += 1
    # w_zs: hs[i] -> hs[i+1] for i in 0..nh-2, then hs[-1] -> 1
    wz_shapes = [(hs[i], hs[i + 1]) for i in range(num_hidden - 1)] + [(hs[-1], 1)]
    for in_f, out_f in wz_shapes:
        params["wz"].append(make_linear(keys[ki], in_f, out_f)); ki += 1
    return params


def icnn_reference(x, params, hs):
    """Pure-JAX reference (mirrors the PyTorch module exactly)."""
    single = x.ndim == 1
    if single:
        x = x[None, :]
    wx, wz = params["wx"], params["wz"]

    def lin(inp, p):
        return inp @ p[0].T + p[1]

    def nn_lin(inp, p, in_f):
        return (1.0 / in_f) * (inp @ jax.nn.softplus(p[0]).T + p[1])

    z = jax.nn.relu(lin(x, wx[0]))
    for i in range(len(hs) - 1):
        z = jax.nn.relu(nn_lin(z, wz[i], hs[i]) + lin(x, wx[i + 1]))
    y = jax.nn.relu(nn_lin(z, wz[-1], hs[-1]) + lin(x, wx[-1]))
    y = jnp.squeeze(y, -1)
    if single:
        y = jnp.squeeze(y, 0)
    return y


if __name__ == "__main__":
    input_size = 8
    hs = [32, 16]
    B = 200                 # deliberately not a multiple of tile_b -> exercises padding
    tile_b = 128            # 2 grid tiles (parallel axis); default 256 for large batches

    key = jax.random.PRNGKey(0)
    kp, kx = jax.random.split(key)
    params = init_params(kp, input_size, hs)
    x = jax.random.normal(kx, (B, input_size), jnp.float32)

    y = icnn_forward(x, params, input_size, hs, tile_b=tile_b)
    y = jax.block_until_ready(y)

    y_ref = icnn_reference(x, params, hs)
    assert y.shape == (B,)
    assert jnp.allclose(y, y_ref, atol=2e-5, rtol=1e-5), (y, y_ref)

    print("KERNEL_OK")
</pallas_src>

<mosaic_0001>
module attributes {stable_mosaic.version = 11 : i64} {
  func.func @_icnn_kernel(%arg0: i32, %arg1: memref<8x128xf32, #tpu.memory_space<vmem>>, %arg2: memref<32x8xf32, #tpu.memory_space<vmem>>, %arg3: memref<32x1xf32, #tpu.memory_space<vmem>>, %arg4: memref<16x8xf32, #tpu.memory_space<vmem>>, %arg5: memref<16x1xf32, #tpu.memory_space<vmem>>, %arg6: memref<1x8xf32, #tpu.memory_space<vmem>>, %arg7: memref<1x1xf32, #tpu.memory_space<vmem>>, %arg8: memref<16x32xf32, #tpu.memory_space<vmem>>, %arg9: memref<16x1xf32, #tpu.memory_space<vmem>>, %arg10: memref<1x16xf32, #tpu.memory_space<vmem>>, %arg11: memref<1x1xf32, #tpu.memory_space<vmem>>, %arg12: memref<1x128xf32, #tpu.memory_space<vmem>>) attributes {dimension_semantics = [#tpu.dimension_semantics<parallel>], iteration_bounds = array<i64: 2>, scalar_prefetch = 0 : i64, scratch_operands = 0 : i64, tpu.core_type = #tpu.core_type<tc>, window_params = [{transform_indices = @transform_0, window_bounds = array<i64: 8, 128>}, {pipeline_mode = #tpu.pipeline_mode<synchronous>, transform_indices = @transform_1, window_bounds = array<i64: 32, 8>}, {pipeline_mode = #tpu.pipeline_mode<synchronous>, transform_indices = @transform_2, window_bounds = array<i64: 32, 1>}, {pipeline_mode = #tpu.pipeline_mode<synchronous>, transform_indices = @transform_3, window_bounds = array<i64: 16, 8>}, {pipeline_mode = #tpu.pipeline_mode<synchronous>, transform_indices = @transform_4, window_bounds = array<i64: 16, 1>}, {pipeline_mode = #tpu.pipeline_mode<synchronous>, transform_indices = @transform_5, window_bounds = array<i64: 1, 8>}, {pipeline_mode = #tpu.pipeline_mode<synchronous>, transform_indices = @transform_6, window_bounds = array<i64: 1, 1>}, {pipeline_mode = #tpu.pipeline_mode<synchronous>, transform_indices = @transform_7, window_bounds = array<i64: 16, 32>}, {pipeline_mode = #tpu.pipeline_mode<synchronous>, transform_indices = @transform_8, window_bounds = array<i64: 16, 1>}, {pipeline_mode = #tpu.pipeline_mode<synchronous>, transform_indices = @transform_9, window_bounds = array<i64: 1, 16>}, {pipeline_mode = #tpu.pipeline_mode<synchronous>, transform_indices = @transform_10, window_bounds = array<i64: 1, 1>}, {transform_indices = @transform_11, window_bounds = array<i64: 1, 128>}]} {
    %c0 = arith.constant 0 : index
    %c0_0 = arith.constant 0 : index
    %0 = vector.load %arg1[%c0, %c0_0] : memref<8x128xf32, #tpu.memory_space<vmem>>, vector<8x128xf32>
    %c0_1 = arith.constant 0 : index
    %c0_2 = arith.constant 0 : index
    %1 = vector.load %arg2[%c0_1, %c0_2] : memref<32x8xf32, #tpu.memory_space<vmem>>, vector<32x8xf32>
    %cst = arith.constant dense<0.000000e+00> : vector<32x128xf32>
    %2 = tpu.matmul %1, %0, %cst {dimension_numbers = #tpu.dot_dimension_numbers<[1], [0], [0], [1], [0, 0, 1, 1], [], []>} : vector<32x8xf32>, vector<8x128xf32>, vector<32x128xf32> -> vector<32x128xf32>
    %c0_3 = arith.constant 0 : index
    %c0_4 = arith.constant 0 : index
    %3 = vector.load %arg3[%c0_3, %c0_4] : memref<32x1xf32, #tpu.memory_space<vmem>>, vector<32x1xf32>
    %4 = vector.broadcast %3 : vector<32x1xf32> to vector<32x128xf32>
    %5 = arith.addf %2, %4 : vector<32x128xf32>
    %cst_5 = arith.constant 0.000000e+00 : f32
    %6 = vector.broadcast %cst_5 : f32 to vector<32x128xf32>
    %7 = arith.maximumf %5, %6 : vector<32x128xf32>
    %c0_6 = arith.constant 0 : index
    %c0_7 = arith.constant 0 : index
    %8 = vector.load %arg8[%c0_6, %c0_7] : memref<16x32xf32, #tpu.memory_space<vmem>>, vector<16x32xf32>
    %cst_8 = arith.constant dense<0.000000e+00> : vector<16x128xf32>
    %9 = tpu.matmul %8, %7, %cst_8 {dimension_numbers = #tpu.dot_dimension_numbers<[1], [0], [0], [1], [0, 0, 1, 1], [], []>} : vector<16x32xf32>, vector<32x128xf32>, vector<16x128xf32> -> vector<16x128xf32>
    %c0_9 = arith.constant 0 : index
    %c0_10 = arith.constant 0 : index
    %10 = vector.load %arg9[%c0_9, %c0_10] : memref<16x1xf32, #tpu.memory_space<vmem>>, vector<16x1xf32>
    %11 = vector.broadcast %10 : vector<16x1xf32> to vector<16x128xf32>
    %12 = arith.addf %9, %11 : vector<16x128xf32>
    %c0_11 = arith.constant 0 : index
    %c0_12 = arith.constant 0 : index
    %13 = vector.load %arg4[%c0_11, %c0_12] : memref<16x8xf32, #tpu.memory_space<vmem>>, vector<16x8xf32>
    %cst_13 = arith.constant dense<0.000000e+00> : vector<16x128xf32>
    %14 = tpu.matmul %13, %0, %cst_13 {dimension_numbers = #tpu.dot_dimension_numbers<[1], [0], [0], [1], [0, 0, 1, 1], [], []>} : vector<16x8xf32>, vector<8x128xf32>, vector<16x128xf32> -> vector<16x128xf32>
    %c0_14 = arith.constant 0 : index
    %c0_15 = arith.constant 0 : index
    %15 = vector.load %arg5[%c0_14, %c0_15] : memref<16x1xf32, #tpu.memory_space<vmem>>, vector<16x1xf32>
    %16 = vector.broadcast %15 : vector<16x1xf32> to vector<16x128xf32>
    %17 = arith.addf %14, %16 : vector<16x128xf32>
    %18 = arith.addf %12, %17 : vector<16x128xf32>
    %cst_16 = arith.constant 0.000000e+00 : f32
    %19 = vector.broadcast %cst_16 : f32 to vector<16x128xf32>
    %20 = arith.maximumf %18, %19 : vector<16x128xf32>
    %c0_17 = arith.constant 0 : index
    %c0_18 = arith.constant 0 : index
    %21 = vector.load %arg10[%c0_17, %c0_18] : memref<1x16xf32, #tpu.memory_space<vmem>>, vector<1x16xf32>
    %cst_19 = arith.constant dense<0.000000e+00> : vector<1x128xf32>
    %22 = tpu.matmul %21, %20, %cst_19 {dimension_numbers = #tpu.dot_dimension_numbers<[1], [0], [0], [1], [0, 0, 1, 1], [], []>} : vector<1x16xf32>, vector<16x128xf32>, vector<1x128xf32> -> vector<1x128xf32>
    %c0_20 = arith.constant 0 : index
    %c0_21 = arith.constant 0 : index
    %23 = vector.load %arg11[%c0_20, %c0_21] : memref<1x1xf32, #tpu.memory_space<vmem>>, vector<1x1xf32>
    %24 = vector.broadcast %23 : vector<1x1xf32> to vector<1x128xf32>
    %25 = arith.addf %22, %24 : vector<1x128xf32>
    %c0_22 = arith.constant 0 : index
    %c0_23 = arith.constant 0 : index
    %26 = vector.load %arg6[%c0_22, %c0_23] : memref<1x8xf32, #tpu.memory_space<vmem>>, vector<1x8xf32>
    %cst_24 = arith.constant dense<0.000000e+00> : vector<1x128xf32>
    %27 = tpu.matmul %26, %0, %cst_24 {dimension_numbers = #tpu.dot_dimension_numbers<[1], [0], [0], [1], [0, 0, 1, 1], [], []>} : vector<1x8xf32>, vector<8x128xf32>, vector<1x128xf32> -> vector<1x128xf32>
    %c0_25 = arith.constant 0 : index
    %c0_26 = arith.constant 0 : index
    %28 = vector.load %arg7[%c0_25, %c0_26] : memref<1x1xf32, #tpu.memory_space<vmem>>, vector<1x1xf32>
    %29 = vector.broadcast %28 : vector<1x1xf32> to vector<1x128xf32>
    %30 = arith.addf %27, %29 : vector<1x128xf32>
    %31 = arith.addf %25, %30 : vector<1x128xf32>
    %cst_27 = arith.constant 0.000000e+00 : f32
    %32 = vector.broadcast %cst_27 : f32 to vector<1x128xf32>
    %33 = arith.maximumf %31, %32 : vector<1x128xf32>
    %c0_28 = arith.constant 0 : index
    %c0_29 = arith.constant 0 : index
    %34 = vector.load %arg12[%c0_28, %c0_29] : memref<1x128xf32, #tpu.memory_space<vmem>>, vector<1x128xf32>
    tpu.vector_store %arg12[%c0_28, %c0_29], %33 {strides = array<i32>} : memref<1x128xf32, #tpu.memory_space<vmem>>, vector<1x128xf32>,
    return
  }
  func.func @transform_0(%arg0: i32) -> (i32, i32) {
    %c0_i32 = arith.constant 0 : i32
    %c0_i32_0 = arith.constant 0 : i32
    return %c0_i32, %arg0 : i32, i32
  }
  func.func @transform_1(%arg0: i32) -> (i32, i32) {
    %c0_i32 = arith.constant 0 : i32
    %c0_i32_0 = arith.constant 0 : i32
    %c0_i32_1 = arith.constant 0 : i32
    return %c0_i32, %c0_i32_0 : i32, i32
  }
  func.func @transform_2(%arg0: i32) -> (i32, i32) {
    %c0_i32 = arith.constant 0 : i32
    %c0_i32_0 = arith.constant 0 : i32
    %c0_i32_1 = arith.constant 0 : i32
    return %c0_i32, %c0_i32_0 : i32, i32
  }
  func.func @transform_3(%arg0: i32) -> (i32, i32) {
    %c0_i32 = arith.constant 0 : i32
    %c0_i32_0 = arith.constant 0 : i32
    %c0_i32_1 = arith.constant 0 : i32
    return %c0_i32, %c0_i32_0 : i32, i32
  }
  func.func @transform_4(%arg0: i32) -> (i32, i32) {
    %c0_i32 = arith.constant 0 : i32
    %c0_i32_0 = arith.constant 0 : i32
    %c0_i32_1 = arith.constant 0 : i32
    return %c0_i32, %c0_i32_0 : i32, i32
  }
  func.func @transform_5(%arg0: i32) -> (i32, i32) {
    %c0_i32 = arith.constant 0 : i32
    %c0_i32_0 = arith.constant 0 : i32
    %c0_i32_1 = arith.constant 0 : i32
    return %c0_i32, %c0_i32_0 : i32, i32
  }
  func.func @transform_6(%arg0: i32) -> (i32, i32) {
    %c0_i32 = arith.constant 0 : i32
    %c0_i32_0 = arith.constant 0 : i32
    %c0_i32_1 = arith.constant 0 : i32
    return %c0_i32, %c0_i32_0 : i32, i32
  }
  func.func @transform_7(%arg0: i32) -> (i32, i32) {
    %c0_i32 = arith.constant 0 : i32
    %c0_i32_0 = arith.constant 0 : i32
    %c0_i32_1 = arith.constant 0 : i32
    return %c0_i32, %c0_i32_0 : i32, i32
  }
  func.func @transform_8(%arg0: i32) -> (i32, i32) {
    %c0_i32 = arith.constant 0 : i32
    %c0_i32_0 = arith.constant 0 : i32
    %c0_i32_1 = arith.constant 0 : i32
    return %c0_i32, %c0_i32_0 : i32, i32
  }
  func.func @transform_9(%arg0: i32) -> (i32, i32) {
    %c0_i32 = arith.constant 0 : i32
    %c0_i32_0 = arith.constant 0 : i32
    %c0_i32_1 = arith.constant 0 : i32
    return %c0_i32, %c0_i32_0 : i32, i32
  }
  func.func @transform_10(%arg0: i32) -> (i32, i32) {
    %c0_i32 = arith.constant 0 : i32
    %c0_i32_0 = arith.constant 0 : i32
    %c0_i32_1 = arith.constant 0 : i32
    return %c0_i32, %c0_i32_0 : i32, i32
  }
  func.func @transform_11(%arg0: i32) -> (i32, i32) {
    %c0_i32 = arith.constant 0 : i32
    %c0_i32_0 = arith.constant 0 : i32
    return %c0_i32, %arg0 : i32, i32
  }
}

</mosaic_0001>

<bundles_post_ra>
// kernel: tpu_custom_call.1
= control target key start
LH: loop header
LB: loop body
LE: loop exit
PB: predicated region body
PF: predicated region fallthrough
CT: control target
= control target key end

     0   :  { %s1397_s0 = inlined_call_operand.vmem [shape: f32[8,256], index: 0, kind: input, shape index: {}]   ;;  %s1398_s1 = inlined_call_operand.vmem [shape: f32[32,8], index: 1, kind: input, shape index: {}]   ;;  %s1399_s2 = inlined_call_operand.vmem [shape: f32[32,1], index: 2, kind: input, shape index: {}]   ;;  %s1400_s3 = inlined_call_operand.vmem [shape: f32[16,8], index: 3, kind: input, shape index: {}]   ;;  %s1401_s4 = inlined_call_operand.vmem [shape: f32[16,1], index: 4, kind: input, shape index: {}]   ;;  %s1402_s5 = inlined_call_operand.vmem [shape: f32[1,8], index: 5, kind: input, shape index: {}]   ;;  %s1403_s6 = inlined_call_operand.<no memory space> [shape: f32[1,1], index: 6, kind: input, shape index: {}]   ;;  %s1404_s7 = inlined_call_operand.vmem [shape: f32[16,32], index: 7, kind: input, shape index: {}]   ;;  %s1405_s8 = inlined_call_operand.vmem [shape: f32[16,1], index: 8, kind: input, shape index: {}]   ;;  %s1406_s9 = inlined_call_operand.vmem [shape: f32[1,16], index: 9, kind: input, shape index: {}]   ;;  %s1407_s11 = inlined_call_operand.hbm [shape: f32[1,256], index: 11, kind: output, shape index: {}]   ;;  %s1408_s10 = inlined_call_operand.<no memory space> [shape: f32[1,1], index: 10, kind: input, shape index: {}]  }
   0x1   :  { %v16_v0 = vstv %s1403_s6  ;;  %v18_v1 = vstv %s1408_s10 }
   0x2   :  { %17 = vst [vmem:[#allocation2] sm:$0x1] %v16_v0  ;;  %19 = vst [vmem:[#allocation3] sm:$0x1] %v18_v1 }
   0x3   :  { %20 = vsyncpa [#allocation5], 0 }
   0x4   :  { %22 = vsyncpa [#allocation5 + $0x1], 0  ;;  %s1225_s21 = smov 0   ;;  %s1227_s22 = smov 0  }
   0x5   :  { %s1229_s23 = smov 0   ;;  %s1231_s24 = smov 0  }
   0x6 LB: > { %s1246_s6 = sadd.s32 4294967295, %s1152_s24   ;;  %s951_s10 = sadd.s32 4294967294, %s1152_s24   ;;  %s1152_s24 = sphi %s1231_s24, %s1414_s24   ;;  %s1148_s23 = sphi %s1229_s23, %s1413_s23   ;;  %s1144_s22 = sphi %s1227_s22, %s1412_s22   ;;  %s1140_s21 = sphi %s1225_s21, %s1411_s21  }
   0x7   : > { %s1250_s25 = sadd.s32 1, %s1152_s24   ;;  %s271_s26 = sadd.s32 1, %s1148_s23 }
   0x8   : > { %s268_s27 = ssub.s32 %s1152_s24, %s1250_s25  ;;  %p281_p0 = scmp.ne.s32.totalorder %s1148_s23, %s1144_s22 }
   0x9   : > { %p269_p1 = scmp.eq.s32.totalorder %s268_s27, 0  ;;  %p282_p2 = scmp.eq.s32.totalorder %s1246_s6, 1 }
   0xa   : > { %p287_p3 = scmp.ne.s32.totalorder %s1144_s22, %s1140_s21  ;;  %p288_p4 = scmp.eq.s32.totalorder %s951_s10, 1 }
   0xb   : > { %s1261_s28 = scalar_select %p269_p1, %s1148_s23, %s271_s26  }
   0xc   : > { %p1263_p5 = por %p282_p2, %p281_p0  ;;  %p1267_p6 = por %p288_p4, %p287_p3 }
   0xd   : > { %p954_p7 = scmp.ge.s32.totalorder %s1152_s24, 1  ;;  %p343_p8 = scmp.lt.s32.totalorder %s1152_s24, 3 }
   0xf   : > { %p344_p9 = pnand %p954_p7, %p343_p8 }
  0x10   : > { %p381_p10 = scmp.lt.s32.totalorder (!%p344_p9), %s1246_s6, 1  ;;  %v386_v2 = vld [vmem:[%s1398_s1] sm:$0xff] (!%p344_p9)  ;;  %vm414_vm0 = vcmask (!%p344_p9), 64512   ;;  %v1154_v3 = vmov (!%p344_p9), 0   ;;  %v392_v4 = vld [vmem:[%s1399_s2 + $0x10] sm:$0xff] (!%p344_p9)  ;;  %v393_v6 = vld [vmem:[%s1399_s2 + $0x18] sm:$0xff] (!%p344_p9)  ;;  %v718_v57 = vlaneseq (!%p344_p9) }
  0x11   : > { %347 = sbr.rel (%p344_p9) target bundleno = 726 (0x2d6), region = 64  ;;  %990 = vmatprep.mubr.msk.f32.mxu0 (!%p344_p9), %vm414_vm0, %v386_v2  ;;  %1089 = vset.pattern.permute.xlu1 (!%p344_p9), %v1154_v3  ;;  %v390_v5 = vld [vmem:[%s1399_s2] sm:$0xff] (!%p344_p9)  ;;  %v391_v7 = vld [vmem:[%s1399_s2 + $0x8] sm:$0xff] (!%p344_p9)  ;;  %v388_v10 = vld [vmem:[%s1398_s1 + $0x10] sm:$0xff] (!%p344_p9)  ;;  %vm530_vm1 = vcmask (!%p344_p9), 261120   ;;  %v1155_v40 = vmov (!%p344_p9), 0.0|0.0  }
  0x12   : > { %1088 = vset.pattern.permute.xlu0 (!%p344_p9), %v1154_v3  ;;  %406 = vperm.xlu1 (!%p344_p9), %1089, %v392_v4   ;;  %v387_v9 = vld [vmem:[%s1398_s1 + $0x8] sm:$0xff] (!%p344_p9)  ;;  %v518_v12 = vld [vmem:[%s1405_s8] sm:$0xff] (!%p344_p9)  ;;  %v389_v13 = vld [vmem:[%s1398_s1 + $0x18] sm:$0xff] (!%p344_p9)  ;;  %vm1156_vm2 = vmmov (!%p344_p9), 0   ;;  %v1157_v41 = vmov (!%p344_p9), 0.0   ;;  %vm722_vm3 = vcmask (!%p344_p9), 130048  }
  0x13   : > { %396 = vperm.xlu0 (!%p344_p9), %1088, %v390_v5   ;;  %v519_v11 = vld [vmem:[%s1405_s8 + $0x8] sm:$0xff] (!%p344_p9)  ;;  %v614_v15 = vld [vmem:[%s1401_s4] sm:$0xff] (!%p344_p9)  ;;  %v719_v58 = vshrl.u32 (!%p344_p9), %v718_v57, 7  ;;  %s379_s17 = sand.u32 (!%p344_p9), 1, %s1144_s22   ;;  %s966_s19 = sshll.u32 (!%p344_p9), %s1246_s6, 4 }
  0x14   : > { %v615_v14 = vld [vmem:[%s1401_s4 + $0x8] sm:$0xff] (!%p344_p9)  ;;  %v797_v16 = vld [vmem:[#allocation2] sm:$0x1] (!%p344_p9)  ;;  %v712_v17 = vld [vmem:[#allocation3] sm:$0x1] (!%p344_p9)  ;;  %s1355_s27 = scalar_lea.hbm (!%p344_p9), %s1407_s11, %s966_s19  ;;  %s884_s12 = scalar_lea.sflag (!%p344_p9), [#allocation5], %s379_s17 }
  0x15   : > { %v516_v18 = vld [vmem:[%s1404_s7] sm:$0xff] (!%p344_p9)  ;;  %v517_v37 = vld [vmem:[%s1404_s7 + $0x8] sm:$0xff] (!%p344_p9)  ;;  %v720_v59 = vsub.s32 (!%p344_p9), 0, %v719_v58 }
  0x16   : > { %411 = vperm.xlu1 (!%p344_p9), %1089, %v393_v6   ;;  %1004 = vmatprep.mubr.msk.f32.mxu1 (!%p344_p9), %vm530_vm1, %v516_v18  ;;  %v612_v38 = vld [vmem:[%s1400_s3] sm:$0xff] (!%p344_p9)  ;;  %v613_v39 = vld [vmem:[%s1400_s3 + $0x8] sm:$0xff] (!%p344_p9) }
  0x17   : > { %401 = vperm.xlu0 (!%p344_p9), %1088, %v391_v7   ;;  %v711_v55 = vld [vmem:[%s1406_s9] sm:$0x1] (!%p344_p9) }
  0x18   : > { %s382_s18 = scalar_select %p381_p10, %s1246_s6, 1  ;;  %v796_v56 = vld [vmem:[%s1402_s5] sm:$0x1] }
  0x19   : > { %s1158_s6 = smov [#allocation4]  }
  0x1a   : > { %s955_s10 = sshll.u32 %s382_s18, 3  ;;  %527 = vperm.xlu1 %1089, %v519_v11   ;;  %s380_s18 = scalar_lea.vmem [#allocation4], %s379_s17 }
  0x1b   : > { %s384_s14 = scalar_lea.vmem %s1397_s0, %s955_s10  ;;  %522 = vperm.xlu0 %1088, %v518_v12   ;;  %s896_s20 = sshll.u32 %s380_s18, 4  ;;  %s1357_s20 = int_to_ptr.vmem [resolvable:$true] %s896_s20 }
  0x1c   : > { %v1294_v8 = vld [vmem:[%s384_s14] sm:$0xff]  ;;  %s1090_s13 = scalar_lea.vmem %s1357_s20, 16  ;;  %s1094_s14 = sshll.u32 %s1158_s6, 4  ;;  %s1095_s14 = int_to_ptr.vmem [resolvable:$false] %s1094_s14 }
  0x1d   : > { %988 = vmatprep.subr.mxu0 %v1294_v8  ;;  %p1091_p11 = scmp.ne.s32.totalorder %s1357_s20, %s1090_s13  ;;  %s1096_s15 = scalar_lea.vmem %s1095_s14, 32 }
  0x1e   : > { %989 = vmatpush3.msra.mxu0 %v1294_v8  ;;  %623 = vperm.xlu1 %1089, %v615_v14   ;;  %p1097_p0 = scmp.lt.s32.totalorder %s1357_s20, %s1095_s14  ;;  %p1098_p1 = scmp.lt.s32.totalorder %s1096_s15, %s1090_s13 }
  0x1f   : > { %991 = vmatmul.mubr.msk.f32.vlgmr.msra.gmra.mrb[0].mxu0 %vm414_vm0, %v387_v9  ;;  %618 = vperm.xlu0 %1088, %v614_v15   ;;  %p1092_p12 = pnand %p1091_p11, %p1263_p5 }
  0x20   : > { %993 = vmatprep.mubr.msk.f32.mxu0 %vm414_vm0, %v388_v10  ;;  %1032 = vmatprep.subr.bf16.mxu0 %v1155_v40  ;;  %p1099_p2 = por %p1098_p1, %p1097_p0 }
  0x21   : > { %p1093_p13 = pneg %p1092_p12 }
  0x22   : > { %800 = vperm.xlu1 %1089, %v797_v16  }
  0x23   : > { %994 = vmatmul.mubr.msk.f32.gmra.mrb[2].mxu0 %vm414_vm0, %v389_v13  ;;  %715 = vperm.xlu0 %1088, %v712_v17   ;;  %p1100_p3 = pnand %p1099_p2, %p1093_p13 }
  0x24   : > { %1016 = vmatprep.mubr.msk.f32.mxu0 %vm1156_vm2, %v1157_v41 }
  0x91   : > { %v407_v20 = vpop.permute.xlu1 %406 }
  0x92   : > { %v397_v19 = vpop.permute.xlu0 %396 }
  0x95   : > { %v412_v27 = vpop.permute.xlu1 %411 }
  0x96   : > { %v402_v21 = vpop.permute.xlu0 %401 }
  0x99   : > { %v528_v42 = vpop.permute.xlu1 %527 }
  0x9a   : > { %v523_v43 = vpop.permute.xlu0 %522 }
  0x9d   : > { %v624_v44 = vpop.permute.xlu1 %623 }
  0x9e   : > { %v1035_v45 = vadd.f32 %v624_v44, %v528_v42  ;;  %v619_v46 = vpop.permute.xlu0 %618 }
  0x9f   : > { %v1037_v47 = vadd.f32 %v619_v46, %v523_v43 }
  0xa1   : > { %v801_v60 = vpop.permute.xlu1 %800 }
  0xa2   : > { %v716_v61 = vpop.permute.xlu0 %715  ;;  %v806_v62 = vrot.slane %v801_v60, %v720_v59 }
  0xa3   : > { %v721_v63 = vrot.slane %v716_v61, %v720_v59 }
  0xa5   : > { %v1039_v0 = vadd.f32 %v806_v62, %v721_v63 }
  0xf2   : > { %v992_v22 = vpop.f32.mrb[0].mxu0 }
  0xf3   : > { %v499_v23 = vadd.f32 %v992_v22, %v402_v21  ;;  %v493_v24 = vpop.f32.mrb[1].mxu0 }
  0xf4   : > { %v494_v25 = vadd.f32 %v493_v24, %v397_v19 }
  0xf5   : > { %v513_v26 = vmax.f32 %v499_v23, 0.0 }
  0xf6   : > { %v512_v28 = vmax.f32 %v494_v25, 0.0  ;;  %v995_v29 = vpop.f32.mrb[2].mxu0 }
  0xf7   : > { %v509_v30 = vadd.f32 %v995_v29, %v412_v27  ;;  %v503_v31 = vpop.f32.mrb[3].mxu0 }
  0xf8   : > { %v504_v32 = vadd.f32 %v503_v31, %v407_v20  ;;  %v1024_v33 = vpack.c.bf16 %v513_v26, %v512_v28 }
  0xf9   : > { %v515_v34 = vmax.f32 %v509_v30, 0.0 }
  0xfa   : > { %v514_v35 = vmax.f32 %v504_v32, 0.0  ;;  %1025 = vmatprep.subr.bf16.mxu1 %v1024_v33 }
  0xfb   : > { %1027 = vmatpush3.bf16.msra.mxu1 %v1024_v33 }
  0xfc   : > { %v1028_v36 = vpack.c.bf16 %v515_v34, %v514_v35 }
  0xfe   : > { %1029 = vmatprep.subr.bf16.mxu1 %v1028_v36 }
  0xff   : > { %1031 = vmatpush3.bf16.msra.mxu1 %v1028_v36 }
 0x100   : > { %1007 = vmatprep.subr.mxu1 %v1294_v8 }
 0x102   : > { %1005 = vmatmul.mubr.msk.f32.vlgmr.msra.gmra.mrb[0].mxu1 %vm530_vm1, %v517_v37 }
 0x103   : > { %1008 = vmatpush3.msra.mxu1 %v1294_v8  ;;  %1009 = vmatprep.mubr.msk.f32.mxu1 %vm414_vm0, %v612_v38 }
 0x10a   : > { %1010 = vmatmul.mubr.msk.f32.vlgmr.msra.gmra.mrb[0].mxu1 %vm414_vm0, %v613_v39 }
 0x1dd   : > { %v1011_v48 = vpop.f32.mrb[0].mxu1 }
 0x1de   : > { %v1036_v49 = vadd.f32 %v1035_v45, %v1011_v48  ;;  %v698_v50 = vpop.f32.mrb[1].mxu1 }
 0x1df   : > { %v1038_v51 = vadd.f32 %v1037_v47, %v698_v50 }
 0x1e0   : > { %v710_v52 = vmax.f32 %v1036_v49, 0.0 }
 0x1e1   : > { %v709_v53 = vmax.f32 %v1038_v51, 0.0 }
 0x1e3   : > { %v1033_v54 = vpack.c.bf16 %v710_v52, %v709_v53 }
 0x1e5   : > { %1034 = vmatpush3.bf16.msra.mxu0 %v1033_v54 }
 0x1e6   : > { %1019 = vmatprep.subr.mxu0 %v1157_v41 }
 0x1e8   : > { %1017 = vmatmul.mubr.msk.f32.vlgmr.msra.gmra.mrb[4].mxu0 %vm722_vm3, %v711_v55 }
 0x1e9   : > { %1020 = vmatpush3.msra.mxu0 %v1294_v8  ;;  %1021 = vmatprep.mubr.msk.f32.mxu0 %vm1156_vm2, %v1157_v41 }
 0x1f0   : > { %1022 = vmatmul.mubr.msk.f32.vlgmr.msra.gmra.mrb[4].mxu0 %vm414_vm0, %v796_v56 }
 0x2c3   : > { %v876_v1 = vpop.f32.mrb[4].mxu0 }
 0x2c4   : > { %v1040_v2 = vadd.f32 %v1039_v0, %v876_v1  ;;  %v1023_v3 = vpop.f32.mrb[5].mxu0 }
 0x2c6   : > { %v881_v4 = vmax.f32 %v1040_v2, 0.0 }
 0x2c8   : > { %882 = vst [vmem:[%s380_s18] sm:$0x1] %v881_v4 }
 0x2c9   : > { %1103 = shalt.err (!%p1100_p3)
}
 0x2ca   : > { %s1104_s16 = scalar_lea.hbm %s1355_s27, 16  ;;  %s1108_s18 = scalar_lea.hbm %s1407_s11, 32 }
 0x2cb   : > { %p1105_p4 = scmp.ne.s32.totalorder %s1355_s27, %s1104_s16  ;;  %p1109_p9 = scmp.lt.u32.totalorder %s1355_s27, %s1407_s11 }
 0x2cc   : > { %p1110_p10 = scmp.lt.u32.totalorder %s1108_s18, %s1104_s16  ;;  %p1112_p12 = scmp.lt.u32.totalorder %s1104_s16, %s1355_s27 }
 0x2cd   : > { %p1106_p7 = pnand %p1105_p4, %p1263_p5 }
 0x2ce   : > { %p1111_p11 = por %p1110_p10, %p1109_p9 }
 0x2cf   : > { %p1107_p8 = pneg %p1106_p7 }
 0x2d0   : > { %p1113_p13 = por %p1112_p12, %p1111_p11 }
 0x2d2   : > { %p1114_p0 = pnand %p1113_p13, %p1107_p8 }
 0x2d4   : > { %1117 = shalt.err (!%p1114_p0)
}
 0x2d5   : > { %1045 = dma.vmem_to_hbm [thread:$0]  (%p1263_p5), %s1357_s20, 16, %s1355_s27, %s884_s12  }
 0x2d6 PF: > { %p1051_p1 = scmp.ge.s32.totalorder %s1152_s24, 2  ;;  %s908_s13 = sand.u32 1, %s1140_s21  }
 0x2d7   : > { %s909_s6 = scalar_lea.sflag [#allocation5], %s908_s13 }
 0x2d8   : > { %p1048_p2 = pnand %p1051_p1, %p1267_p6 }
 0x2da   : > { %1135 = dma.done.wait (!%p1048_p2), %s909_s6, 16  }
 0x2db   : > { %1137 = vsyncadd (!%p1048_p2), %s909_s6, 4294967280  ;;  %p25_p3 = scmp.ge.s32.totalorder %s1250_s25, 4   ;;  %s1411_s21 = smov %s1144_s22 }
 0x2dc   : > { %s1412_s22 = smov %s1148_s23  ;;  %s1413_s23 = smov %s1261_s28 }
 0x2dd   : > { %s1414_s24 = smov %s1250_s25  ;;  %27 = sbr.rel (!%p25_p3) target bundleno = 6 (0x6), region = 99 }
 0x2e4   :  { %913 = vsyncpa [#allocation5], 1 }
 0x2e5   :  { %915 = vsyncpa [#allocation5 + $0x1], 1 }

</bundles_post_ra>
